<compile_context>
chip_gen: v7x
topology: tpu7x:2x2x1
jax: 0.10.0
libtpu: 0.0.40
codegen_flags: <defaults>
</compile_context>

<pallas_src>
import functools
import math

import jax
import jax.numpy as jnp
from jax.experimental import pallas as pl
from jax.experimental.pallas import tpu as pltpu

LANE = 128


def _round_up(x, m):
    return (x + m - 1) // m * m


def _tpu_generation():
    try:
        kind = jax.devices()[0].device_kind.lower()
    except Exception:
        return "unknown"
    if "v5 lite" in kind or "v5e" in kind or "v5lite" in kind:
        return "v5e"
    if "v6" in kind:
        return "v6e"
    if "v7" in kind:
        return "v7x"
    return "unknown"


# Per-generation row tile and scoped-VMEM budget (see perf review).
_GEN_CONFIG = {
    "v5e": dict(tm=128, vmem_limit=96 * 1024 * 1024),
    "v6e": dict(tm=256, vmem_limit=96 * 1024 * 1024),
    "v7x": dict(tm=256, vmem_limit=48 * 1024 * 1024),
    "unknown": dict(tm=128, vmem_limit=32 * 1024 * 1024),
}


# ----------------------------- kernels -----------------------------

def fused_small_kernel(adj_ref, scale_ref, x_ref, w1_ref, b1_ref, w2_ref, b2_ref,
                       out_ref, *, nclass):
    """Whole forward in one launch (small graphs): adjacency read once, reused for
    both aggregations; layer-1 reassociated so no z1 intermediate is needed."""
    bf16 = jnp.bfloat16
    a = adj_ref[...].astype(jnp.float32).astype(bf16)     # integer edge counts
    scale = scale_ref[...]                                 # (npad, 1) f32 = 1/deg
    # layer 1: relu(A_norm @ (x W1 + b1)) == relu((scale * (C @ x)) @ W1 + b1)
    m1 = jnp.dot(a, x_ref[...], preferred_element_type=jnp.float32) * scale
    h = jnp.maximum(
        jnp.dot(m1.astype(bf16), w1_ref[...], preferred_element_type=jnp.float32)
        + b1_ref[...], 0.0)
    # dropout = identity in eval; the reference's second relu is idempotent -> dropped.
    z2 = (jnp.dot(h.astype(bf16), w2_ref[...], preferred_element_type=jnp.float32)
          + b2_ref[...]).astype(bf16)
    # layer-2 mean aggregation + masked log_softmax (padded class lanes -> -inf)
    y = jnp.dot(a, z2, preferred_element_type=jnp.float32) * scale
    col = jax.lax.broadcasted_iota(jnp.int32, y.shape, 1)
    y = jnp.where(col < nclass, y, -1e30)
    m = jnp.max(y, axis=1, keepdims=True)
    z = y - m
    lse = jnp.log(jnp.sum(jnp.exp(z), axis=1, keepdims=True))
    out_ref[...] = z - lse


def layer12_kernel(adj_ref, x_ref, scale_ref, w1_ref, b1_ref, w2_ref, b2_ref,
                   z2_ref, acc_ref):
    """Pass A (tiled): K-tiled C@x accumulation, then scale, @W1+b1, relu, @W2+b2."""
    k = pl.program_id(1)

    @pl.when(k == 0)
    def _():
        acc_ref[...] = jnp.zeros_like(acc_ref)

    a = adj_ref[...].astype(jnp.float32).astype(jnp.bfloat16)
    acc_ref[...] += jnp.dot(a, x_ref[...], preferred_element_type=jnp.float32)

    @pl.when(k == pl.num_programs(1) - 1)
    def _():
        bf16 = jnp.bfloat16
        m1 = acc_ref[...] * scale_ref[...]                 # exact f32 1/deg row scale
        h = jnp.maximum(
            jnp.dot(m1.astype(bf16), w1_ref[...], preferred_element_type=jnp.float32)
            + b1_ref[...], 0.0)
        z2 = (jnp.dot(h.astype(bf16), w2_ref[...], preferred_element_type=jnp.float32)
              + b2_ref[...])
        z2_ref[...] = z2.astype(z2_ref.dtype)


def agg2_logsoftmax_kernel(adj_ref, z2_ref, scale_ref, out_ref, acc_ref, *, nclass):
    """Pass B (tiled): K-tiled C@z2 accumulation, scale, masked log_softmax."""
    k = pl.program_id(1)

    @pl.when(k == 0)
    def _():
        acc_ref[...] = jnp.zeros_like(acc_ref)

    a = adj_ref[...].astype(jnp.float32).astype(jnp.bfloat16)
    acc_ref[...] += jnp.dot(a, z2_ref[...], preferred_element_type=jnp.float32)

    @pl.when(k == pl.num_programs(1) - 1)
    def _():
        y = acc_ref[...] * scale_ref[...]
        col = jax.lax.broadcasted_iota(jnp.int32, y.shape, 1)
        y = jnp.where(col < nclass, y, -1e30)
        m = jnp.max(y, axis=1, keepdims=True)
        z = y - m
        lse = jnp.log(jnp.sum(jnp.exp(z), axis=1, keepdims=True))
        out_ref[...] = z - lse


# ----------------------------- wrapper -----------------------------

def mpnn_forward(x, w1, b1, w2, b2, adj_counts, inv_deg, num_owned, *,
                 tm=None, vmem_limit=None, small_graph_max_npad=1024):
    n, nfeat = x.shape
    nhid = w1.shape[1]
    nclass = w2.shape[1]

    cfg = _GEN_CONFIG[_tpu_generation()]
    if tm is None:
        tm = cfg["tm"]
    if vmem_limit is None:
        vmem_limit = cfg["vmem_limit"]

    # lane-dense 128 padding; tiled path additionally needs npad % tm == 0
    npad_small = _round_up(n, LANE)
    use_fast = npad_small <= small_graph_max_npad
    npad = npad_small if use_fast else _round_up(n, math.lcm(tm, LANE))
    fpad = _round_up(nfeat, LANE)
    hpad = _round_up(nhid, LANE)
    cpad = _round_up(nclass, LANE)

    bf16 = jnp.bfloat16
    pad2 = lambda a, r, c: jnp.pad(a, ((0, r - a.shape[0]), (0, c - a.shape[1])))

    x_p = pad2(x, npad, fpad).astype(bf16)
    # int8 edge counts (exact for counts <= 127) halve the dominant N^2 HBM stream;
    # normalization is the f32 1/deg scale below (padded rows get scale 0).
    adj_p = pad2(jnp.clip(adj_counts, 0.0, 127.0), npad, npad).astype(jnp.int8)
    scale_p = pad2(inv_deg, npad, 1).astype(jnp.float32)
    w1_p = pad2(w1, fpad, hpad).astype(bf16)
    b1_p = pad2(b1, 1, hpad).astype(jnp.float32)
    w2_p = pad2(w2, hpad, cpad).astype(bf16)
    b2_p = pad2(b2, 1, cpad).astype(jnp.float32)

    if use_fast:
        # single launch, everything VMEM resident
        params = pltpu.CompilerParams(
            dimension_semantics=("arbitrary",),
            vmem_limit_bytes=vmem_limit)
        out = pl.pallas_call(
            functools.partial(fused_small_kernel, nclass=nclass),
            grid=(1,),
            in_specs=[
                pl.BlockSpec((npad, npad), lambda i: (0, 0)),   # adjacency counts
                pl.BlockSpec((npad, 1), lambda i: (0, 0)),      # 1/deg
                pl.BlockSpec((npad, fpad), lambda i: (0, 0)),   # x
                pl.BlockSpec((fpad, hpad), lambda i: (0, 0)),   # W1
                pl.BlockSpec((1, hpad), lambda i: (0, 0)),      # b1
                pl.BlockSpec((hpad, cpad), lambda i: (0, 0)),   # W2
                pl.BlockSpec((1, cpad), lambda i: (0, 0)),      # b2
            ],
            out_specs=pl.BlockSpec((npad, cpad), lambda i: (0, 0)),
            out_shape=jax.ShapeDtypeStruct((npad, cpad), jnp.float32),
            compiler_params=params,
            cost_estimate=pl.CostEstimate(
                flops=2 * npad * npad * (fpad + cpad)
                      + 2 * npad * (fpad * hpad + hpad * cpad),
                transcendentals=npad * cpad,
                bytes_accessed=npad * npad + 2 * npad * fpad + 4 * npad
                               + 2 * (fpad * hpad + hpad * cpad)
                               + 4 * npad * cpad),
        )(adj_p, scale_p, x_p, w1_p, b1_p, w2_p, b2_p)
        return out[:num_owned, :nclass]

    # ------------- tiled path: row tiles ("parallel") x source blocks ("arbitrary")
    params = pltpu.CompilerParams(
        dimension_semantics=("parallel", "arbitrary"),
        vmem_limit_bytes=vmem_limit)
    grid_rows = npad // tm
    grid_k = npad // tm

    # Pass A: z2 = relu((scale*(C@x)) @ W1 + b1) @ W2 + b2, K-tiled over source nodes
    z2 = pl.pallas_call(
        layer12_kernel,
        grid=(grid_rows, grid_k),
        in_specs=[
            pl.BlockSpec((tm, tm), lambda i, k: (i, k)),     # adjacency counts block
            pl.BlockSpec((tm, fpad), lambda i, k: (k, 0)),   # x, streamed per K block
            pl.BlockSpec((tm, 1), lambda i, k: (i, 0)),      # 1/deg row scale
            pl.BlockSpec((fpad, hpad), lambda i, k: (0, 0)),
            pl.BlockSpec((1, hpad), lambda i, k: (0, 0)),
            pl.BlockSpec((hpad, cpad), lambda i, k: (0, 0)),
            pl.BlockSpec((1, cpad), lambda i, k: (0, 0)),
        ],
        out_specs=pl.BlockSpec((tm, cpad), lambda i, k: (i, 0)),
        out_shape=jax.ShapeDtypeStruct((npad, cpad), bf16),
        scratch_shapes=[pltpu.VMEM((tm, fpad), jnp.float32)],
        compiler_params=params,
        cost_estimate=pl.CostEstimate(
            flops=2 * npad * npad * fpad + 2 * npad * (fpad * hpad + hpad * cpad),
            transcendentals=0,
            bytes_accessed=npad * npad + grid_rows * npad * fpad * 2
                           + npad * cpad * 2
                           + 2 * (fpad * hpad + hpad * cpad) + 4 * npad),
    )(adj_p, x_p, scale_p, w1_p, b1_p, w2_p, b2_p)

    # Pass B: out = log_softmax(scale*(C@z2)) -- only row tiles covering owned nodes
    owned_rows = _round_up(max(num_owned, 1), tm)
    out = pl.pallas_call(
        functools.partial(agg2_logsoftmax_kernel, nclass=nclass),
        grid=(owned_rows // tm, grid_k),
        in_specs=[
            pl.BlockSpec((tm, tm), lambda i, k: (i, k)),     # adjacency counts block
            pl.BlockSpec((tm, cpad), lambda i, k: (k, 0)),   # z2, streamed per K block
            pl.BlockSpec((tm, 1), lambda i, k: (i, 0)),      # 1/deg row scale
        ],
        out_specs=pl.BlockSpec((tm, cpad), lambda i, k: (i, 0)),
        out_shape=jax.ShapeDtypeStruct((owned_rows, cpad), jnp.float32),
        scratch_shapes=[pltpu.VMEM((tm, cpad), jnp.float32)],
        compiler_params=params,
        cost_estimate=pl.CostEstimate(
            flops=2 * owned_rows * npad * cpad,
            transcendentals=owned_rows * cpad,
            bytes_accessed=owned_rows * npad
                           + (owned_rows // tm) * npad * cpad * 2
                           + 4 * owned_rows * cpad + 4 * owned_rows),
    )(adj_p, z2, scale_p)

    return out[:num_owned, :nclass]


# ----------------------------- helpers / references -----------------------------

def build_graph_counts(edge_src, edge_dst, num_nodes):
    """Dense edge-count matrix C[target, source] with self loops, and per-row 1/deg,
    together reproducing MessagePassing(aggr='mean') with add_self_loops."""
    c = jnp.zeros((num_nodes, num_nodes), dtype=jnp.float32)
    c = c.at[edge_dst, edge_src].add(1.0)
    c = c + jnp.eye(num_nodes, dtype=jnp.float32)          # add_self_loops
    deg = jnp.sum(c, axis=1, keepdims=True)                # >= 1 due to self loops
    return c, 1.0 / deg


def reference_forward_f32(x, w1, b1, w2, b2, counts, inv_deg, num_owned):
    adj = counts * inv_deg
    h = jnp.maximum(adj @ (x @ w1 + b1), 0.0)
    y = adj @ (h @ w2 + b2)
    return jax.nn.log_softmax(y, axis=1)[:num_owned]


def reference_forward_matched(x, w1, b1, w2, b2, counts, inv_deg, num_owned):
    """Mirrors the kernel arithmetic: bf16 operands / f32 accumulation, reassociated
    layer-1 bias, exact f32 1/deg row scale."""
    bf16, f32 = jnp.bfloat16, jnp.float32
    c = counts.astype(bf16)
    m1 = jnp.dot(c, x.astype(bf16), preferred_element_type=f32) * inv_deg
    h = jnp.maximum(jnp.dot(m1.astype(bf16), w1.astype(bf16),
                            preferred_element_type=f32) + b1, 0.0)
    z2 = (jnp.dot(h.astype(bf16), w2.astype(bf16),
                  preferred_element_type=f32) + b2).astype(bf16)
    y = jnp.dot(c, z2, preferred_element_type=f32) * inv_deg
    return jax.nn.log_softmax(y, axis=1)[:num_owned]


def _run_case(key, n, nfeat, nhid, nclass, e, num_owned, **fwd_kwargs):
    kx, ks, kd, kw1, kb1, kw2, kb2 = jax.random.split(key, 7)
    x = jax.random.normal(kx, (n, nfeat), dtype=jnp.float32)
    edge_src = jax.random.randint(ks, (e,), 0, n)
    edge_dst = jax.random.randint(kd, (e,), 0, n)
    counts, inv_deg = build_graph_counts(edge_src, edge_dst, n)

    # Linear params: torch stores (out,in); kept (in,out) here so the kernel does x@W+b.
    w1 = jax.random.normal(kw1, (nfeat, nhid), dtype=jnp.float32) * (1.0 / nfeat ** 0.5)
    b1 = jax.random.normal(kb1, (1, nhid), dtype=jnp.float32) * 0.01
    w2 = jax.random.normal(kw2, (nhid, nclass), dtype=jnp.float32) * (1.0 / nhid ** 0.5)
    b2 = jax.random.normal(kb2, (1, nclass), dtype=jnp.float32) * 0.01

    out = mpnn_forward(x, w1, b1, w2, b2, counts, inv_deg, num_owned, **fwd_kwargs)
    out = jax.block_until_ready(out)

    ref_m = reference_forward_matched(x, w1, b1, w2, b2, counts, inv_deg, num_owned)
    ref_f = reference_forward_f32(x, w1, b1, w2, b2, counts, inv_deg, num_owned)

    assert out.shape == (num_owned, nclass)
    assert bool(jnp.all(jnp.isfinite(out)))
    assert bool(jnp.max(jnp.abs(out - ref_m)) < 3e-2)    # same arithmetic, tight
    assert bool(jnp.max(jnp.abs(out - ref_f)) < 1.5e-1)  # bf16 vs f32 sanity


if __name__ == "__main__":
    key = jax.random.PRNGKey(0)
    k1, k2 = jax.random.split(key)

    # Small shapes consistent with MPNNNet(nfeat, nhid, nclass, ...) -- fast path
    _run_case(k1, n=32, nfeat=16, nhid=32, nclass=8, e=64, num_owned=24)

    # Larger partition -- forces the row/K-tiled two-pass path
    _run_case(k2, n=300, nfeat=16, nhid=32, nclass=8, e=1200, num_owned=200,
              small_graph_max_npad=0)

    print("KERNEL_OK")
</pallas_src>

<mosaic_0001>
module attributes {stable_mosaic.version = 11 : i64} {
  func.func @fused_small_kernel(%arg0: i32, %arg1: memref<128x128xi8, #tpu.memory_space<vmem>>, %arg2: memref<128x1xf32, #tpu.memory_space<vmem>>, %arg3: memref<128x128xbf16, #tpu.memory_space<vmem>>, %arg4: memref<128x128xbf16, #tpu.memory_space<vmem>>, %arg5: memref<1x128xf32, #tpu.memory_space<vmem>>, %arg6: memref<128x128xbf16, #tpu.memory_space<vmem>>, %arg7: memref<1x128xf32, #tpu.memory_space<vmem>>, %arg8: memref<128x128xf32, #tpu.memory_space<vmem>>) attributes {dimension_semantics = [#tpu.dimension_semantics<arbitrary>], iteration_bounds = array<i64: 1>, scalar_prefetch = 0 : i64, scratch_operands = 0 : i64, tpu.core_type = #tpu.core_type<tc>, window_params = [{pipeline_mode = #tpu.pipeline_mode<synchronous>, transform_indices = @transform_0, window_bounds = array<i64: 128, 128>}, {pipeline_mode = #tpu.pipeline_mode<synchronous>, transform_indices = @transform_1, window_bounds = array<i64: 128, 1>}, {pipeline_mode = #tpu.pipeline_mode<synchronous>, transform_indices = @transform_2, window_bounds = array<i64: 128, 128>}, {pipeline_mode = #tpu.pipeline_mode<synchronous>, transform_indices = @transform_3, window_bounds = array<i64: 128, 128>}, {pipeline_mode = #tpu.pipeline_mode<synchronous>, transform_indices = @transform_4, window_bounds = array<i64: 1, 128>}, {pipeline_mode = #tpu.pipeline_mode<synchronous>, transform_indices = @transform_5, window_bounds = array<i64: 128, 128>}, {pipeline_mode = #tpu.pipeline_mode<synchronous>, transform_indices = @transform_6, window_bounds = array<i64: 1, 128>}, {pipeline_mode = #tpu.pipeline_mode<synchronous>, transform_indices = @transform_7, window_bounds = array<i64: 128, 128>}]} {
    %c0 = arith.constant 0 : index
    %c0_0 = arith.constant 0 : index
    %0 = vector.load %arg1[%c0, %c0_0] : memref<128x128xi8, #tpu.memory_space<vmem>>, vector<128x128xi8>
    %1 = arith.sitofp %0 : vector<128x128xi8> to vector<128x128xf32>
    %2 = arith.truncf %1 : vector<128x128xf32> to vector<128x128xbf16>
    %c0_1 = arith.constant 0 : index
    %c0_2 = arith.constant 0 : index
    %3 = vector.load %arg2[%c0_1, %c0_2] : memref<128x1xf32, #tpu.memory_space<vmem>>, vector<128x1xf32>
    %c0_3 = arith.constant 0 : index
    %c0_4 = arith.constant 0 : index
    %4 = vector.load %arg3[%c0_3, %c0_4] : memref<128x128xbf16, #tpu.memory_space<vmem>>, vector<128x128xbf16>
    %cst = arith.constant dense<0.000000e+00> : vector<128x128xf32>
    %5 = tpu.matmul %2, %4, %cst {dimension_numbers = #tpu.dot_dimension_numbers<[1], [0], [0], [1], [0, 0, 1, 1], [], []>} : vector<128x128xbf16>, vector<128x128xbf16>, vector<128x128xf32> -> vector<128x128xf32>
    %6 = vector.broadcast %3 : vector<128x1xf32> to vector<128x128xf32>
    %7 = arith.mulf %5, %6 : vector<128x128xf32>
    %8 = arith.truncf %7 : vector<128x128xf32> to vector<128x128xbf16>
    %c0_5 = arith.constant 0 : index
    %c0_6 = arith.constant 0 : index
    %9 = vector.load %arg4[%c0_5, %c0_6] : memref<128x128xbf16, #tpu.memory_space<vmem>>, vector<128x128xbf16>
    %cst_7 = arith.constant dense<0.000000e+00> : vector<128x128xf32>
    %10 = tpu.matmul %8, %9, %cst_7 {dimension_numbers = #tpu.dot_dimension_numbers<[1], [0], [0], [1], [0, 0, 1, 1], [], []>} : vector<128x128xbf16>, vector<128x128xbf16>, vector<128x128xf32> -> vector<128x128xf32>
    %c0_8 = arith.constant 0 : index
    %c0_9 = arith.constant 0 : index
    %11 = vector.load %arg5[%c0_8, %c0_9] : memref<1x128xf32, #tpu.memory_space<vmem>>, vector<1x128xf32>
    %12 = vector.broadcast %11 : vector<1x128xf32> to vector<128x128xf32>
    %13 = arith.addf %10, %12 : vector<128x128xf32>
    %cst_10 = arith.constant 0.000000e+00 : f32
    %14 = vector.broadcast %cst_10 : f32 to vector<128x128xf32>
    %15 = arith.maximumf %13, %14 : vector<128x128xf32>
    %16 = arith.truncf %15 : vector<128x128xf32> to vector<128x128xbf16>
    %c0_11 = arith.constant 0 : index
    %c0_12 = arith.constant 0 : index
    %17 = vector.load %arg6[%c0_11, %c0_12] : memref<128x128xbf16, #tpu.memory_space<vmem>>, vector<128x128xbf16>
    %cst_13 = arith.constant dense<0.000000e+00> : vector<128x128xf32>
    %18 = tpu.matmul %16, %17, %cst_13 {dimension_numbers = #tpu.dot_dimension_numbers<[1], [0], [0], [1], [0, 0, 1, 1], [], []>} : vector<128x128xbf16>, vector<128x128xbf16>, vector<128x128xf32> -> vector<128x128xf32>
    %c0_14 = arith.constant 0 : index
    %c0_15 = arith.constant 0 : index
    %19 = vector.load %arg7[%c0_14, %c0_15] : memref<1x128xf32, #tpu.memory_space<vmem>>, vector<1x128xf32>
    %20 = vector.broadcast %19 : vector<1x128xf32> to vector<128x128xf32>
    %21 = arith.addf %18, %20 : vector<128x128xf32>
    %22 = arith.truncf %21 : vector<128x128xf32> to vector<128x128xbf16>
    %cst_16 = arith.constant dense<0.000000e+00> : vector<128x128xf32>
    %23 = tpu.matmul %2, %22, %cst_16 {dimension_numbers = #tpu.dot_dimension_numbers<[1], [0], [0], [1], [0, 0, 1, 1], [], []>} : vector<128x128xbf16>, vector<128x128xbf16>, vector<128x128xf32> -> vector<128x128xf32>
    %24 = vector.broadcast %3 : vector<128x1xf32> to vector<128x128xf32>
    %25 = arith.mulf %23, %24 : vector<128x128xf32>
    %26 = tpu.iota {dimensions = array<i32: 1>} : vector<128x128xi32>
    %c8_i32 = arith.constant 8 : i32
    %27 = vector.broadcast %c8_i32 : i32 to vector<128x128xi32>
    %28 = arith.cmpi slt, %26, %27 : vector<128x128xi32>
    %cst_17 = arith.constant -1.000000e+30 : f32
    %29 = vector.broadcast %cst_17 : f32 to vector<128x128xf32>
    %30 = arith.select %28, %25, %29 : vector<128x128xi1>, vector<128x128xf32>
    %cst_18 = arith.constant dense<0xFF800000> : vector<128xf32>
    %31 = vector.multi_reduction <maximumf>, %30, %cst_18 [1] : vector<128x128xf32> to vector<128xf32>
    %32 = vector.shape_cast %31 : vector<128xf32> to vector<128x1xf32>
    %33 = vector.broadcast %32 : vector<128x1xf32> to vector<128x128xf32>
    %34 = arith.subf %30, %33 : vector<128x128xf32>
    %35 = math.exp %34 : vector<128x128xf32>
    %cst_19 = arith.constant dense<0.000000e+00> : vector<128xf32>
    %36 = vector.multi_reduction <add>, %35, %cst_19 [1] : vector<128x128xf32> to vector<128xf32>
    %37 = vector.shape_cast %36 : vector<128xf32> to vector<128x1xf32>
    %38 = math.log %37 : vector<128x1xf32>
    %39 = vector.broadcast %38 : vector<128x1xf32> to vector<128x128xf32>
    %40 = arith.subf %34, %39 : vector<128x128xf32>
    %c0_20 = arith.constant 0 : index
    %c0_21 = arith.constant 0 : index
    %41 = vector.load %arg8[%c0_20, %c0_21] : memref<128x128xf32, #tpu.memory_space<vmem>>, vector<128x128xf32>
    tpu.vector_store %arg8[%c0_20, %c0_21], %40 {strides = array<i32>} : memref<128x128xf32, #tpu.memory_space<vmem>>, vector<128x128xf32>,
    return
  }
  func.func @transform_0(%arg0: i32) -> (i32, i32) {
    %c0_i32 = arith.constant 0 : i32
    %c0_i32_0 = arith.constant 0 : i32
    %c0_i32_1 = arith.constant 0 : i32
    return %c0_i32, %c0_i32_0 : i32, i32
  }
  func.func @transform_1(%arg0: i32) -> (i32, i32) {
    %c0_i32 = arith.constant 0 : i32
    %c0_i32_0 = arith.constant 0 : i32
    %c0_i32_1 = arith.constant 0 : i32
    return %c0_i32, %c0_i32_0 : i32, i32
  }
  func.func @transform_2(%arg0: i32) -> (i32, i32) {
    %c0_i32 = arith.constant 0 : i32
    %c0_i32_0 = arith.constant 0 : i32
    %c0_i32_1 = arith.constant 0 : i32
    return %c0_i32, %c0_i32_0 : i32, i32
  }
  func.func @transform_3(%arg0: i32) -> (i32, i32) {
    %c0_i32 = arith.constant 0 : i32
    %c0_i32_0 = arith.constant 0 : i32
    %c0_i32_1 = arith.constant 0 : i32
    return %c0_i32, %c0_i32_0 : i32, i32
  }
  func.func @transform_4(%arg0: i32) -> (i32, i32) {
    %c0_i32 = arith.constant 0 : i32
    %c0_i32_0 = arith.constant 0 : i32
    %c0_i32_1 = arith.constant 0 : i32
    return %c0_i32, %c0_i32_0 : i32, i32
  }
  func.func @transform_5(%arg0: i32) -> (i32, i32) {
    %c0_i32 = arith.constant 0 : i32
    %c0_i32_0 = arith.constant 0 : i32
    %c0_i32_1 = arith.constant 0 : i32
    return %c0_i32, %c0_i32_0 : i32, i32
  }
  func.func @transform_6(%arg0: i32) -> (i32, i32) {
    %c0_i32 = arith.constant 0 : i32
    %c0_i32_0 = arith.constant 0 : i32
    %c0_i32_1 = arith.constant 0 : i32
    return %c0_i32, %c0_i32_0 : i32, i32
  }
  func.func @transform_7(%arg0: i32) -> (i32, i32) {
    %c0_i32 = arith.constant 0 : i32
    %c0_i32_0 = arith.constant 0 : i32
    %c0_i32_1 = arith.constant 0 : i32
    return %c0_i32, %c0_i32_0 : i32, i32
  }
}

</mosaic_0001>

<bundles_post_ra>
// kernel: tpu_custom_call.1
= control target key start
LH: loop header
LB: loop body
LE: loop exit
PB: predicated region body
PF: predicated region fallthrough
CT: control target
= control target key end

     0   :  { %12 = vsyncpa [#allocation3], 0  ;;  %s1858_s0 = inlined_call_operand.hbm [shape: s8[128,128], index: 0, kind: input, shape index: {}]   ;;  %s1859_s1 = inlined_call_operand.vmem [shape: f32[128,1], index: 1, kind: input, shape index: {}]   ;;  %s1860_s2 = inlined_call_operand.vmem [shape: bf16[128,128], index: 2, kind: input, shape index: {}]   ;;  %s1861_s3 = inlined_call_operand.vmem [shape: bf16[128,128], index: 3, kind: input, shape index: {}]   ;;  %s1862_s4 = inlined_call_operand.vmem [shape: f32[1,128], index: 4, kind: input, shape index: {}]   ;;  %s1863_s5 = inlined_call_operand.hbm [shape: bf16[128,128], index: 5, kind: input, shape index: {}]   ;;  %s1864_s6 = inlined_call_operand.vmem [shape: f32[1,128], index: 6, kind: input, shape index: {}]   ;;  %s1865_s7 = inlined_call_operand.hbm [shape: f32[128,128], index: 7, kind: output, shape index: {}]  }
   0x1   :  { %13 = vsyncpa [#allocation6], 0 }
   0x2   :  { %14 = vsyncpa [#allocation4], 0  ;;  %s1431_s24 = smov [#allocation2]   ;;  %s1359_s28 = scalar_lea.hbm %s1858_s0, 512 }
   0x3   :  { %s20_s25 = sshll.u32 %s1431_s24, 4  ;;  %p1360_p0 = scmp.ne.s32.totalorder %s1858_s0, %s1359_s28  ;;  %s21_s25 = int_to_ptr.vmem [resolvable:$true] %s20_s25 }
   0x4   :  { %p1363_p1 = scmp.lt.u32.totalorder %s1359_s28, %s1858_s0 }
   0x6   :  { %p1365_p2 = pnand %p1363_p1, %p1360_p0 }
   0x8   :  { %1368 = shalt.err (!%p1365_p2)
}
   0x9   :  { %s1369_s10 = scalar_lea.vmem %s21_s25, 512  ;;  %p1374_p4 = scmp.lt.s32.totalorder %s21_s25, %s21_s25 }
   0xa   :  { %p1370_p3 = scmp.ne.s32.totalorder %s21_s25, %s1369_s10  ;;  %p1375_p5 = scmp.lt.s32.totalorder %s1369_s10, %s1369_s10 }
   0xc   :  { %p1376_p6 = por %p1375_p5, %p1374_p4 }
   0xe   :  { %p1377_p7 = pnand %p1376_p6, %p1370_p3 }
  0x10   :  { %1380 = shalt.err (!%p1377_p7)
}
  0x11   :  { %s1432_s11 = smov 128   ;;  %s1433_s12 = smov 8  }
  0x12   :  { %26 = dma.hbm_to_vmem [thread:$0]  %s1858_s0, 512, %s21_s25, [#allocation3], %s1432_s11, %s1432_s11, %s1433_s12  }
  0x13   :  { %s1434_s15 = smov [#allocation5]   ;;  %s1381_s19 = scalar_lea.hbm %s1863_s5, 1024 }
  0x14   :  { %s40_s16 = sshll.u32 %s1434_s15, 4  ;;  %p1382_p8 = scmp.ne.s32.totalorder %s1863_s5, %s1381_s19  ;;  %s41_s16 = int_to_ptr.vmem [resolvable:$true] %s40_s16 }
  0x15   :  { %p1385_p9 = scmp.lt.u32.totalorder %s1381_s19, %s1863_s5 }
  0x17   :  { %p1387_p10 = pnand %p1385_p9, %p1382_p8 }
  0x19   :  { %1390 = shalt.err (!%p1387_p10)
}
  0x1a   :  { %s1391_s24 = scalar_lea.vmem %s41_s16, 1024  ;;  %p1396_p12 = scmp.lt.s32.totalorder %s41_s16, %s41_s16 }
  0x1b   :  { %p1392_p11 = scmp.ne.s32.totalorder %s41_s16, %s1391_s24  ;;  %p1397_p13 = scmp.lt.s32.totalorder %s1391_s24, %s1391_s24 }
  0x1d   :  { %p1398_p0 = por %p1397_p13, %p1396_p12 }
  0x1f   :  { %p1399_p1 = pnand %p1398_p0, %p1392_p11 }
  0x21   :  { %1402 = shalt.err (!%p1399_p1)
}
  0x22   :  { %s1435_s0 = smov 64   ;;  %s1436_s25 = smov 4  }
  0x23   :  { %46 = dma.hbm_to_vmem [thread:$0]  %s1863_s5, 1024, %s41_s16, [#allocation6], %s1435_s0, %s1435_s0, %s1436_s25  }
  0x24   :  { %1425 = dma.done.wait [#allocation3], 512  }
  0x25   :  { %1426 = vsyncadd [#allocation3], 4294966784 }
  0x26   :  { %1427 = dma.done.wait [#allocation6], 1024  }
  0x27   :  { %1428 = vsyncadd [#allocation6], 4294966272  ;;  %v1437_v0 = vmov 0   ;;  %v1271_v1 = vld [vmem:[%s1860_s2] sm:$0xff]   ;;  %v1272_v2 = vld [vmem:[%s1860_s2 + $0x8] sm:$0xff]  }
  0x28   :  { %1269 = vset.pattern.permute.xlu0 %v1437_v0  ;;  %1270 = vset.pattern.permute.xlu1 %v1437_v0  ;;  %v1273_v3 = vld [vmem:[%s1860_s2 + $0x10] sm:$0xff]   ;;  %v1274_v4 = vld [vmem:[%s1860_s2 + $0x18] sm:$0xff]   ;;  %v1518_v5 = vld [vmem:[#allocation2] sm:$0xff] }
  0x29   :  { %1133 = vmatprep.subr.bf16.mxu0 %v1271_v1  ;;  %v60_v6 = vunpack.c.l.s8.bf16 %v1518_v5  ;;  %v68_v7 = vld [vmem:[%s1859_s1] sm:$0xff]  ;;  %v70_v8 = vld [vmem:[%s1859_s1 + $0x10] sm:$0xff]  ;;  %v69_v9 = vld [vmem:[%s1859_s1 + $0x8] sm:$0xff]  ;;  %v61_v29 = vunpack.c.h.s8.bf16 %v1518_v5  ;;  %v830_v5 = vlaneseq }
  0x2a   :  { %1134 = vmatpush3.bf16.msra.mxu0 %v1271_v1  ;;  %247 = vperm.xlu0 %1269, %v68_v7   ;;  %v71_v10 = vld [vmem:[%s1859_s1 + $0x18] sm:$0xff]  ;;  %v1275_v11 = vld [vmem:[%s1860_s2 + $0x20] sm:$0xff]   ;;  %v1276_v12 = vld [vmem:[%s1860_s2 + $0x28] sm:$0xff]  }
  0x2b   :  { %1135 = vmatprep.subr.bf16.mxu0 %v1272_v2  ;;  %257 = vperm.xlu1 %1270, %v70_v8   ;;  %v72_v13 = vld [vmem:[%s1859_s1 + $0x20] sm:$0xff]  ;;  %v73_v14 = vld [vmem:[%s1859_s1 + $0x28] sm:$0xff]  ;;  %v74_v16 = vld [vmem:[%s1859_s1 + $0x30] sm:$0xff] }
  0x2c   :  { %1149 = vmatprep.mubr.bf16.mxu0 %v60_v6  ;;  %v1279_v15 = vld [vmem:[%s1861_s3] sm:$0xff]   ;;  %v75_v17 = vld [vmem:[%s1859_s1 + $0x38] sm:$0xff]  ;;  %v1280_v18 = vld [vmem:[%s1861_s3 + $0x8] sm:$0xff]  }
  0x2d   :  { %1165 = vmatprep.subr.bf16.mxu1 %v1279_v15  ;;  %v1277_v19 = vld [vmem:[%s1860_s2 + $0x30] sm:$0xff]   ;;  %v76_v20 = vld [vmem:[%s1859_s1 + $0x40] sm:$0xff]  ;;  %v77_v21 = vld [vmem:[%s1859_s1 + $0x48] sm:$0xff] }
  0x2e   :  { %1136 = vmatpush3.bf16.msra.mxu0 %v1272_v2  ;;  %252 = vperm.xlu0 %1269, %v69_v9   ;;  %v1281_v22 = vld [vmem:[%s1861_s3 + $0x10] sm:$0xff]   ;;  %v1278_v23 = vld [vmem:[%s1860_s2 + $0x38] sm:$0xff]   ;;  %v1583_v27 = vld [vmem:[#allocation2 + $0x8] sm:$0xff] }
  0x2f   :  { %1137 = vmatprep.subr.bf16.mxu0 %v1273_v3  ;;  %262 = vperm.xlu1 %1270, %v71_v10   ;;  %v1282_v24 = vld [vmem:[%s1861_s3 + $0x18] sm:$0xff]   ;;  %v78_v25 = vld [vmem:[%s1859_s1 + $0x50] sm:$0xff]  ;;  %v1283_v28 = vld [vmem:[%s1861_s3 + $0x20] sm:$0xff]   ;;  %v62_v30 = vunpack.c.l.s8.bf16 %v1583_v27  ;;  %v63_v37 = vunpack.c.h.s8.bf16 %v1583_v27 }
  0x30   :  { %1166 = vmatpush3.bf16.msra.mxu1 %v1279_v15  ;;  %v79_v26 = vld [vmem:[%s1859_s1 + $0x58] sm:$0xff]  ;;  %v80_v31 = vld [vmem:[%s1859_s1 + $0x60] sm:$0xff]  ;;  %v81_v32 = vld [vmem:[%s1859_s1 + $0x68] sm:$0xff] }
  0x31   :  { %1167 = vmatprep.subr.bf16.mxu1 %v1280_v18  ;;  %v1284_v33 = vld [vmem:[%s1861_s3 + $0x28] sm:$0xff]   ;;  %v82_v34 = vld [vmem:[%s1859_s1 + $0x70] sm:$0xff]  ;;  %v83_v36 = vld [vmem:[%s1859_s1 + $0x78] sm:$0xff] }
  0x32   :  { %1138 = vmatpush3.bf16.msra.mxu0 %v1273_v3  ;;  %267 = vperm.xlu0 %1269, %v72_v13   ;;  %v1606_v35 = vld [vmem:[#allocation2 + $0x10] sm:$0xff]  ;;  %v1617_v39 = vld [vmem:[#allocation2 + $0x18] sm:$0xff]  ;;  %v1287_v45 = vld [vmem:[#allocation5] sm:$0xff]  }
  0x33   :  { %1139 = vmatprep.subr.bf16.mxu0 %v1274_v4  ;;  %272 = vperm.xlu1 %1270, %v73_v14   ;;  %v64_v38 = vunpack.c.l.s8.bf16 %v1606_v35  ;;  %v65_v40 = vunpack.c.h.s8.bf16 %v1606_v35  ;;  %v66_v41 = vunpack.c.l.s8.bf16 %v1617_v39  ;;  %v67_v42 = vunpack.c.h.s8.bf16 %v1617_v39  ;;  %v1285_v43 = vld [vmem:[%s1861_s3 + $0x30] sm:$0xff]   ;;  %v1286_v44 = vld [vmem:[%s1861_s3 + $0x38] sm:$0xff]   ;;  %v1288_v46 = vld [vmem:[#allocation5 + $0x8] sm:$0xff]  }
  0x34   :  { %1168 = vmatpush3.bf16.msra.mxu1 %v1280_v18  ;;  %v1289_v47 = vld [vmem:[#allocation5 + $0x10] sm:$0xff]   ;;  %v1290_v48 = vld [vmem:[#allocation5 + $0x18] sm:$0xff]   ;;  %v1291_v49 = vld [vmem:[#allocation5 + $0x20] sm:$0xff]  }
  0x35   :  { %1169 = vmatprep.subr.bf16.mxu1 %v1281_v22  ;;  %v1292_v50 = vld [vmem:[#allocation5 + $0x28] sm:$0xff]  }
  0x36   :  { %1140 = vmatpush3.bf16.msra.mxu0 %v1274_v4  ;;  %277 = vperm.xlu0 %1269, %v74_v16  }
  0x37   :  { %1141 = vmatprep.subr.bf16.mxu0 %v1275_v11  ;;  %282 = vperm.xlu1 %1270, %v75_v17  }
  0x38   :  { %1170 = vmatpush3.bf16.msra.mxu1 %v1281_v22 }
  0x39   :  { %1171 = vmatprep.subr.bf16.mxu1 %v1282_v24 }
  0x3a   :  { %1142 = vmatpush3.bf16.msra.mxu0 %v1275_v11  ;;  %287 = vperm.xlu0 %1269, %v76_v20  }
  0x3b   :  { %1143 = vmatprep.subr.bf16.mxu0 %v1276_v12  ;;  %292 = vperm.xlu1 %1270, %v77_v21  }
  0x3c   :  { %1172 = vmatpush3.bf16.msra.mxu1 %v1282_v24 }
  0x3d   :  { %1173 = vmatprep.subr.bf16.mxu1 %v1283_v28 }
  0x3e   :  { %1144 = vmatpush3.bf16.msra.mxu0 %v1276_v12  ;;  %297 = vperm.xlu0 %1269, %v78_v25  }
  0x3f   :  { %1145 = vmatprep.subr.bf16.mxu0 %v1277_v19  ;;  %302 = vperm.xlu1 %1270, %v79_v26  }
  0x40   :  { %1174 = vmatpush3.bf16.msra.mxu1 %v1283_v28 }
  0x41   :  { %1175 = vmatprep.subr.bf16.mxu1 %v1284_v33 }
  0x42   :  { %1146 = vmatpush3.bf16.msra.mxu0 %v1277_v19  ;;  %307 = vperm.xlu0 %1269, %v80_v31  }
  0x43   :  { %1147 = vmatprep.subr.bf16.mxu0 %v1278_v23  ;;  %312 = vperm.xlu1 %1270, %v81_v32  }
  0x44   :  { %1176 = vmatpush3.bf16.msra.mxu1 %v1284_v33 }
  0x45   :  { %1177 = vmatprep.subr.bf16.mxu1 %v1285_v43 }
  0x46   :  { %1148 = vmatpush3.bf16.msra.mxu0 %v1278_v23  ;;  %317 = vperm.xlu0 %1269, %v82_v34  }
  0x47   :  { %322 = vperm.xlu1 %1270, %v83_v36   ;;  %1197 = vmatprep.subr.bf16.mxu0 %v1287_v45 }
  0x48   :  { %1178 = vmatpush3.bf16.msra.mxu1 %v1285_v43 }
  0x49   :  { %1150 = vmatmul.mubr.bf16.vlgmr.msra.gmra.mrb[0].mxu0 %v61_v29  ;;  %1179 = vmatprep.subr.bf16.mxu1 %v1286_v44 }
  0x4a   :  { %1153 = vmatprep.mubr.bf16.mxu0 %v62_v30  ;;  %1198 = vmatpush3.bf16.msra.mxu0 %v1287_v45 }
  0x4b   :  { %1199 = vmatprep.subr.bf16.mxu0 %v1288_v46 }
  0x4c   :  { %1180 = vmatpush3.bf16.msra.mxu1 %v1286_v44 }
  0x4e   :  { %1200 = vmatpush3.bf16.msra.mxu0 %v1288_v46 }
  0x4f   :  { %1201 = vmatprep.subr.bf16.mxu0 %v1289_v47 }
  0x51   :  { %1154 = vmatmul.mubr.bf16.gmra.mrb[4].mxu0 %v63_v37 }
  0x52   :  { %1157 = vmatprep.mubr.bf16.mxu0 %v64_v38  ;;  %1202 = vmatpush3.bf16.msra.mxu0 %v1289_v47 }
  0x53   :  { %1203 = vmatprep.subr.bf16.mxu0 %v1290_v48 }
  0x56   :  { %1204 = vmatpush3.bf16.msra.mxu0 %v1290_v48 }
  0x57   :  { %1205 = vmatprep.subr.bf16.mxu0 %v1291_v49 }
  0x59   :  { %1158 = vmatmul.mubr.bf16.gmra.mrb[8].mxu0 %v65_v40 }
  0x5a   :  { %1161 = vmatprep.mubr.bf16.mxu0 %v66_v41  ;;  %1206 = vmatpush3.bf16.msra.mxu0 %v1291_v49 }
  0x5b   :  { %1207 = vmatprep.subr.bf16.mxu0 %v1292_v50 }
  0x5e   :  { %1208 = vmatpush3.bf16.msra.mxu0 %v1292_v50 }
  0x61   :  { %1162 = vmatmul.mubr.bf16.gmra.mrb[12].mxu0 %v67_v42 }
  0xa9   :  { %v1634_v51 = vpop.permute.xlu0 %247 }
  0xaa   :  { %v1636_v52 = vpop.permute.xlu1 %257 }
  0xad   :  { %v1638_v53 = vpop.permute.xlu0 %252 }
  0xae   :  { %v1640_v54 = vpop.permute.xlu1 %262 }
  0xb1   :  { %v1642_v55 = vpop.permute.xlu0 %267 }
  0xb2   :  { %v1644_v56 = vpop.permute.xlu1 %272 }
  0xb5   :  { %v1646_v58 = vpop.permute.xlu0 %277 }
  0xb6   :  { %v1648_v60 = vpop.permute.xlu1 %282 }
  0xb9   :  { %v1654_v7 = vpop.permute.xlu0 %287 }
  0xba   :  { %v1656_v8 = vpop.permute.xlu1 %292 }
  0xbd   :  { %v1662_v17 = vpop.permute.xlu0 %297 }
  0xbe   :  { %v1664_v19 = vpop.permute.xlu1 %302 }
  0xc1   :  { %v1666_v24 = vpop.permute.xlu0 %307 }
  0xc2   :  { %v1670_v31 = vpop.permute.xlu1 %312 }
  0xc5   :  { %v1674_v44 = vpop.permute.xlu0 %317 }
  0xc6   :  { %v1676_v46 = vpop.permute.xlu1 %322 }
 0x11c   :  { %v1151_v57 = vpop.f32.mrb[0].mxu0 }
 0x11d   :  { %v182_v59 = vpop.f32.mrb[1].mxu0  ;;  %v327_v62 = vmul.f32 %v1151_v57, %v1636_v52 }
 0x11e   :  { %v1152_v61 = vpop.f32.mrb[2].mxu0  ;;  %v325_v1 = vmul.f32 %v1634_v51, %v182_v59 }
 0x11f   :  { %v328_v63 = vmul.f32 %v1152_v61, %v1640_v54  ;;  %v185_v0 = vpop.f32.mrb[3].mxu0 }
 0x120   :  { %v326_v2 = vmul.f32 %v1638_v53, %v185_v0  ;;  %v1294_v0 = vld [vmem:[#allocation5 + $0x38] sm:$0xff]  }
 0x121   :  { %v342_v3 = vpack.c.bf16 %v328_v63, %v327_v62  ;;  %v1293_v63 = vld [vmem:[#allocation5 + $0x30] sm:$0xff]  }
 0x122   :  { %v341_v4 = vpack.c.bf16 %v326_v2, %v325_v1  ;;  %1209 = vmatprep.subr.bf16.mxu0 %v1293_v63  ;;  %v1051_v1 = vld [vmem:[%s1862_s4] ss:$0 sm:$0xff] }
 0x123   :  { %1210 = vmatpush3.bf16.msra.mxu0 %v1293_v63 }
 0x124   :  { %v1155_v9 = vpop.f32.mrb[4].mxu0  ;;  %1181 = vmatprep.mubr.bf16.mxu1 %v341_v4  ;;  %1211 = vmatprep.subr.bf16.mxu0 %v1294_v0 }
 0x125   :  { %v198_v10 = vpop.f32.mrb[5].mxu0  ;;  %1182 = vmatmul.mubr.bf16.vlgmr.msra.gmra.mrb[0].mxu1 %v342_v3  ;;  %v331_v12 = vmul.f32 %v1155_v9, %v1646_v58 }
 0x126   :  { %v1156_v11 = vpop.f32.mrb[6].mxu0  ;;  %v329_v15 = vmul.f32 %v1642_v55, %v198_v10 }
 0x127   :  { %v332_v13 = vmul.f32 %v1156_v11, %v1648_v60  ;;  %v201_v14 = vpop.f32.mrb[7].mxu0  ;;  %1212 = vmatpush3.bf16.msra.mxu0 %v1294_v0 }
 0x128   :  { %v330_v16 = vmul.f32 %v1644_v56, %v201_v14 }
 0x129   :  { %v344_v18 = vpack.c.bf16 %v332_v13, %v331_v12 }
 0x12a   :  { %v343_v20 = vpack.c.bf16 %v330_v16, %v329_v15 }
 0x12c   :  { %v1159_v21 = vpop.f32.mrb[8].mxu0  ;;  %1185 = vmatprep.mubr.bf16.mxu1 %v343_v20 }
 0x12d   :  { %v214_v22 = vpop.f32.mrb[9].mxu0  ;;  %1186 = vmatmul.mubr.bf16.gmra.mrb[4].mxu1 %v344_v18  ;;  %v335_v25 = vmul.f32 %v1159_v21, %v1662_v17 }
 0x12e   :  { %v1160_v23 = vpop.f32.mrb[10].mxu0  ;;  %v333_v32 = vmul.f32 %v1654_v7, %v214_v22 }
 0x12f   :  { %v336_v26 = vmul.f32 %v1160_v23, %v1664_v19  ;;  %v217_v28 = vpop.f32.mrb[11].mxu0 }
 0x130   :  { %v334_v33 = vmul.f32 %v1656_v8, %v217_v28 }
 0x131   :  { %v346_v34 = vpack.c.bf16 %v336_v26, %v335_v25 }
 0x132   :  { %v345_v36 = vpack.c.bf16 %v334_v33, %v333_v32 }
 0x134   :  { %v1163_v43 = vpop.f32.mrb[12].mxu0  ;;  %1189 = vmatprep.mubr.bf16.mxu1 %v345_v36 }
 0x135   :  { %v230_v45 = vpop.f32.mrb[13].mxu0  ;;  %1190 = vmatmul.mubr.bf16.gmra.mrb[8].mxu1 %v346_v34  ;;  %v339_v48 = vmul.f32 %v1163_v43, %v1674_v44 }
 0x136   :  { %v1164_v47 = vpop.f32.mrb[14].mxu0  ;;  %v337_v57 = vmul.f32 %v1666_v24, %v230_v45 }
 0x137   :  { %v340_v49 = vmul.f32 %v1164_v47, %v1676_v46  ;;  %v233_v50 = vpop.f32.mrb[15].mxu0 }
 0x138   :  { %v338_v59 = vmul.f32 %v1670_v31, %v233_v50 }
 0x139   :  { %v348_v61 = vpack.c.bf16 %v340_v49, %v339_v48 }
 0x13a   :  { %v347_v62 = vpack.c.bf16 %v338_v59, %v337_v57 }
 0x13c   :  { %1193 = vmatprep.mubr.bf16.mxu1 %v347_v62 }
 0x13d   :  { %1194 = vmatmul.mubr.bf16.gmra.mrb[12].mxu1 %v348_v61 }
 0x13e   :  { %1245 = vmatprep.mubr.bf16.mxu1 %v60_v6 }
 0x1f8   :  { %v1183_v2 = vpop.f32.mrb[0].mxu1 }
 0x1f9   :  { %v463_v3 = vadd.f32 %v1183_v2, %v1051_v1  ;;  %v454_v4 = vpop.f32.mrb[1].mxu1 }
 0x1fa   :  { %v455_v9 = vadd.f32 %v1051_v1, %v454_v4  ;;  %v1184_v10 = vpop.f32.mrb[2].mxu1 }
 0x1fb   :  { %v466_v11 = vadd.f32 %v1184_v10, %v1051_v1  ;;  %v457_v12 = vpop.f32.mrb[3].mxu1  ;;  %v519_v14 = vmax.f32 %v463_v3, 0.0 }
 0x1fc   :  { %v458_v13 = vadd.f32 %v1051_v1, %v457_v12  ;;  %v517_v15 = vmax.f32 %v455_v9, 0.0 }
 0x1fd   :  { %v520_v6 = vmax.f32 %v466_v11, 0.0 }
 0x1fe   :  { %v518_v16 = vmax.f32 %v458_v13, 0.0 }
 0x1ff   :  { %v534_v18 = vpack.c.bf16 %v520_v6, %v519_v14 }
 0x200   :  { %v533_v20 = vpack.c.bf16 %v518_v16, %v517_v15  ;;  %v1187_v21 = vpop.f32.mrb[4].mxu1 }
 0x201   :  { %v479_v22 = vadd.f32 %v1187_v21, %v1051_v1  ;;  %v470_v23 = vpop.f32.mrb[5].mxu1 }
 0x202   :  { %v471_v25 = vadd.f32 %v1051_v1, %v470_v23  ;;  %v1188_v26 = vpop.f32.mrb[6].mxu1  ;;  %1213 = vmatprep.mubr.bf16.mxu0 %v533_v20 }
 0x203   :  { %v482_v28 = vadd.f32 %v1188_v26, %v1051_v1  ;;  %v473_v32 = vpop.f32.mrb[7].mxu1  ;;  %1214 = vmatmul.mubr.bf16.vlgmr.msra.gmra.mrb[16].mxu0 %v534_v18  ;;  %v523_v34 = vmax.f32 %v479_v22, 0.0 }
 0x204   :  { %v474_v33 = vadd.f32 %v1051_v1, %v473_v32  ;;  %v521_v43 = vmax.f32 %v471_v25, 0.0 }
 0x205   :  { %v524_v36 = vmax.f32 %v482_v28, 0.0 }
 0x206   :  { %v522_v45 = vmax.f32 %v474_v33, 0.0  ;;  %v1060_v33 = vld [vmem:[%s1864_s6] ss:$0 sm:$0xff]  ;;  %s1438_s6 = smov [#allocation7]  }
 0x207   :  { %v536_v47 = vpack.c.bf16 %v524_v36, %v523_v34  ;;  %s1030_s24 = sshll.u32 %s1438_s6, 4  ;;  %s1031_s24 = int_to_ptr.vmem [resolvable:$true] %s1030_s24 }
 0x208   :  { %v535_v48 = vpack.c.bf16 %v522_v45, %v521_v43  ;;  %v1191_v49 = vpop.f32.mrb[8].mxu1  ;;  %s1403_s0 = scalar_lea.vmem %s1031_s24, 2048  ;;  %p1408_p3 = scmp.lt.s32.totalorder %s1031_s24, %s1031_s24 }
 0x209   :  { %v495_v50 = vadd.f32 %v1191_v49, %v1051_v1  ;;  %v486_v57 = vpop.f32.mrb[9].mxu1  ;;  %p1404_p2 = scmp.ne.s32.totalorder %s1031_s24, %s1403_s0  ;;  %p1409_p4 = scmp.lt.s32.totalorder %s1403_s0, %s1403_s0 }
 0x20a   :  { %v487_v59 = vadd.f32 %v1051_v1, %v486_v57  ;;  %v1192_v61 = vpop.f32.mrb[10].mxu1  ;;  %1217 = vmatprep.mubr.bf16.mxu0 %v535_v48 }
 0x20b   :  { %v498_v62 = vadd.f32 %v1192_v61, %v1051_v1  ;;  %v489_v63 = vpop.f32.mrb[11].mxu1  ;;  %1218 = vmatmul.mubr.bf16.gmra.mrb[20].mxu0 %v536_v47  ;;  %v527_v2 = vmax.f32 %v495_v50, 0.0  ;;  %p1410_p5 = por %p1409_p4, %p1408_p3 }
 0x20c   :  { %v490_v0 = vadd.f32 %v1051_v1, %v489_v63  ;;  %v525_v4 = vmax.f32 %v487_v59, 0.0 }
 0x20d   :  { %v528_v3 = vmax.f32 %v498_v62, 0.0  ;;  %p1411_p6 = pnand %p1410_p5, %p1404_p2 }
 0x20e   :  { %v526_v9 = vmax.f32 %v490_v0, 0.0 }
 0x20f   :  { %v538_v10 = vpack.c.bf16 %v528_v3, %v527_v2 }
 0x210   :  { %v537_v11 = vpack.c.bf16 %v526_v9, %v525_v4  ;;  %v1195_v12 = vpop.f32.mrb[12].mxu1 }
 0x211   :  { %v511_v13 = vadd.f32 %v1195_v12, %v1051_v1  ;;  %v502_v14 = vpop.f32.mrb[13].mxu1 }
 0x212   :  { %v503_v6 = vadd.f32 %v1051_v1, %v502_v14  ;;  %v1196_v15 = vpop.f32.mrb[14].mxu1  ;;  %1221 = vmatprep.mubr.bf16.mxu0 %v537_v11 }
 0x213   :  { %v514_v16 = vadd.f32 %v1196_v15, %v1051_v1  ;;  %v505_v18 = vpop.f32.mrb[15].mxu1  ;;  %1222 = vmatmul.mubr.bf16.gmra.mrb[24].mxu0 %v538_v10  ;;  %v531_v21 = vmax.f32 %v511_v13, 0.0 }
 0x214   :  { %v506_v20 = vadd.f32 %v1051_v1, %v505_v18  ;;  %v529_v23 = vmax.f32 %v503_v6, 0.0 }
 0x215   :  { %v532_v22 = vmax.f32 %v514_v16, 0.0 }
 0x216   :  { %v530_v25 = vmax.f32 %v506_v20, 0.0 }
 0x217   :  { %v540_v26 = vpack.c.bf16 %v532_v22, %v531_v21 }
 0x218   :  { %v539_v28 = vpack.c.bf16 %v530_v25, %v529_v23 }
 0x21a   :  { %1225 = vmatprep.mubr.bf16.mxu0 %v539_v28 }
 0x21b   :  { %1226 = vmatmul.mubr.bf16.gmra.mrb[28].mxu0 %v540_v26 }
 0x2d6   :  { %v1215_v32 = vpop.f32.mrb[16].mxu0 }
 0x2d7   :  { %v646_v34 = vpop.f32.mrb[17].mxu0  ;;  %v655_v43 = vadd.f32 %v1215_v32, %v1060_v33 }
 0x2d8   :  { %v1216_v36 = vpop.f32.mrb[18].mxu0  ;;  %v647_v48 = vadd.f32 %v1060_v33, %v646_v34 }
 0x2d9   :  { %v658_v45 = vadd.f32 %v1216_v36, %v1060_v33  ;;  %v649_v47 = vpop.f32.mrb[19].mxu0 }
 0x2da   :  { %v650_v1 = vadd.f32 %v1060_v33, %v649_v47 }
 0x2db   :  { %v710_v49 = vpack.c.bf16 %v658_v45, %v655_v43 }
 0x2dc   :  { %v709_v50 = vpack.c.bf16 %v650_v1, %v647_v48 }
 0x2de   :  { %v1219_v57 = vpop.f32.mrb[20].mxu0  ;;  %1229 = vmatprep.subr.bf16.mxu1 %v709_v50 }
 0x2df   :  { %v662_v59 = vpop.f32.mrb[21].mxu0  ;;  %1230 = vmatpush3.bf16.msra.mxu1 %v709_v50  ;;  %v671_v62 = vadd.f32 %v1219_v57, %v1060_v33 }
 0x2e0   :  { %v1220_v61 = vpop.f32.mrb[22].mxu0  ;;  %1231 = vmatprep.subr.bf16.mxu1 %v710_v49  ;;  %v663_v2 = vadd.f32 %v1060_v33, %v662_v59 }
 0x2e1   :  { %v674_v63 = vadd.f32 %v1220_v61, %v1060_v33  ;;  %v665_v0 = vpop.f32.mrb[23].mxu0 }
 0x2e2   :  { %v666_v3 = vadd.f32 %v1060_v33, %v665_v0 }
 0x2e3   :  { %v712_v4 = vpack.c.bf16 %v674_v63, %v671_v62  ;;  %1232 = vmatpush3.bf16.msra.mxu1 %v710_v49 }
 0x2e4   :  { %v711_v9 = vpack.c.bf16 %v666_v3, %v663_v2 }
 0x2e6   :  { %v1223_v10 = vpop.f32.mrb[24].mxu0  ;;  %1233 = vmatprep.subr.bf16.mxu1 %v711_v9 }
 0x2e7   :  { %v678_v11 = vpop.f32.mrb[25].mxu0  ;;  %1234 = vmatpush3.bf16.msra.mxu1 %v711_v9  ;;  %v687_v13 = vadd.f32 %v1223_v10, %v1060_v33 }
 0x2e8   :  { %v1224_v12 = vpop.f32.mrb[26].mxu0  ;;  %1235 = vmatprep.subr.bf16.mxu1 %v712_v4  ;;  %v679_v15 = vadd.f32 %v1060_v33, %v678_v11 }
 0x2e9   :  { %v690_v14 = vadd.f32 %v1224_v12, %v1060_v33  ;;  %v681_v6 = vpop.f32.mrb[27].mxu0 }
 0x2ea   :  { %v682_v16 = vadd.f32 %v1060_v33, %v681_v6 }
 0x2eb   :  { %v714_v18 = vpack.c.bf16 %v690_v14, %v687_v13  ;;  %1236 = vmatpush3.bf16.msra.mxu1 %v712_v4 }
 0x2ec   :  { %v713_v20 = vpack.c.bf16 %v682_v16, %v679_v15 }
 0x2ee   :  { %v1227_v21 = vpop.f32.mrb[28].mxu0  ;;  %1237 = vmatprep.subr.bf16.mxu1 %v713_v20 }
 0x2ef   :  { %v694_v22 = vpop.f32.mrb[29].mxu0  ;;  %1238 = vmatpush3.bf16.msra.mxu1 %v713_v20  ;;  %v703_v25 = vadd.f32 %v1227_v21, %v1060_v33 }
 0x2f0   :  { %v1228_v23 = vpop.f32.mrb[30].mxu0  ;;  %1239 = vmatprep.subr.bf16.mxu1 %v714_v18  ;;  %v695_v32 = vadd.f32 %v1060_v33, %v694_v22 }
 0x2f1   :  { %v706_v26 = vadd.f32 %v1228_v23, %v1060_v33  ;;  %v697_v28 = vpop.f32.mrb[31].mxu0 }
 0x2f2   :  { %v698_v34 = vadd.f32 %v1060_v33, %v697_v28 }
 0x2f3   :  { %v716_v36 = vpack.c.bf16 %v706_v26, %v703_v25  ;;  %1240 = vmatpush3.bf16.msra.mxu1 %v714_v18 }
 0x2f4   :  { %v715_v43 = vpack.c.bf16 %v698_v34, %v695_v32 }
 0x2f6   :  { %1241 = vmatprep.subr.bf16.mxu1 %v715_v43 }
 0x2f7   :  { %1242 = vmatpush3.bf16.msra.mxu1 %v715_v43 }
 0x2f8   :  { %1243 = vmatprep.subr.bf16.mxu1 %v716_v36 }
 0x2fb   :  { %1244 = vmatpush3.bf16.msra.mxu1 %v716_v36 }
 0x2fe   :  { %1246 = vmatmul.mubr.bf16.vlgmr.msra.gmra.mrb[16].mxu1 %v61_v29  ;;  %v1704_v29 = vand.u32 127, %v830_v5 }
 0x2ff   :  { %1249 = vmatprep.mubr.bf16.mxu1 %v62_v30 }
 0x300   :  { %vm832_vm0 = vcmp.lt.s32.totalorder %v1704_v29, 8 }
 0x306   :  { %1250 = vmatmul.mubr.bf16.gmra.mrb[20].mxu1 %v63_v37 }
 0x307   :  { %1253 = vmatprep.mubr.bf16.mxu1 %v64_v38 }
 0x30e   :  { %1254 = vmatmul.mubr.bf16.gmra.mrb[24].mxu1 %v65_v40 }
 0x30f   :  { %1257 = vmatprep.mubr.bf16.mxu1 %v66_v41 }
 0x316   :  { %1258 = vmatmul.mubr.bf16.gmra.mrb[28].mxu1 %v67_v42 }
 0x3d1   :  { %v1247_v33 = vpop.f32.mrb[16].mxu1 }
 0x3d2   :  { %v816_v27 = vmul.f32 %v1247_v33, %v1636_v52  ;;  %v751_v30 = vpop.f32.mrb[17].mxu1 }
 0x3d3   :  { %v1248_v37 = vpop.f32.mrb[18].mxu1  ;;  %v814_v38 = vmul.f32 %v751_v30, %v1634_v51 }
 0x3d4   :  { %v754_v35 = vpop.f32.mrb[19].mxu1  ;;  %v835_v40 = vsel %vm832_vm0, %v816_v27, -1e+30  ;;  %v817_v42 = vmul.f32 %v1248_v37, %v1640_v54 }
 0x3d5   :  { %v815_v41 = vmul.f32 %v754_v35, %v1638_v53  ;;  %853 = vmax.xlane.f32.xlu0 %v835_v40  ;;  %v833_v52 = vsel %vm832_vm0, %v814_v38, -1e+30 }
 0x3d6   :  { %v836_v50 = vsel %vm832_vm0, %v817_v42, -1e+30 }
 0x3d7   :  { %v1714_v39 = vsel %vm832_vm0, %v815_v41, -1e+30 }
 0x3d8   :  { %851 = vmax.xlane.f32.xlu1 %v1714_v39 }
 0x3d9   :  { %849 = vmax.xlane.f32.xlu0 %v833_v52  ;;  %v1251_v51 = vpop.f32.mrb[20].mxu1 }
 0x3da   :  { %v820_v45 = vmul.f32 %v1251_v51, %v1646_v58  ;;  %v767_v47 = vpop.f32.mrb[21].mxu1 }
 0x3db   :  { %v1252_v48 = vpop.f32.mrb[22].mxu1  ;;  %v818_v53 = vmul.f32 %v767_v47, %v1642_v55 }
 0x3dc   :  { %v821_v1 = vmul.f32 %v1252_v48, %v1648_v60  ;;  %v770_v49 = vpop.f32.mrb[23].mxu1  ;;  %v839_v54 = vsel %vm832_vm0, %v820_v45, -1e+30 }
 0x3dd   :  { %855 = vmax.xlane.f32.xlu0 %v836_v50  ;;  %861 = vmax.xlane.f32.xlu1 %v839_v54  ;;  %v819_v57 = vmul.f32 %v770_v49, %v1644_v56  ;;  %v837_v58 = vsel %vm832_vm0, %v818_v53, -1e+30 }
 0x3de   :  { %v840_v59 = vsel %vm832_vm0, %v821_v1, -1e+30 }
 0x3df   :  { %v838_v56 = vsel %vm832_vm0, %v819_v57, -1e+30 }
 0x3e1   :  { %857 = vmax.xlane.f32.xlu1 %v837_v58  ;;  %863 = vmax.xlane.f32.xlu0 %v840_v59  ;;  %v1255_v55 = vpop.f32.mrb[24].mxu1 }
 0x3e2   :  { %v824_v60 = vmul.f32 %v1255_v55, %v1662_v17  ;;  %v783_v61 = vpop.f32.mrb[25].mxu1 }
 0x3e3   :  { %v1256_v62 = vpop.f32.mrb[26].mxu1  ;;  %v822_v63 = vmul.f32 %v783_v61, %v1654_v7 }
 0x3e4   :  { %v825_v0 = vmul.f32 %v1256_v62, %v1664_v19  ;;  %v786_v2 = vpop.f32.mrb[27].mxu1  ;;  %v843_v3 = vsel %vm832_vm0, %v824_v60, -1e+30 }
 0x3e5   :  { %859 = vmax.xlane.f32.xlu0 %v838_v56  ;;  %869 = vmax.xlane.f32.xlu1 %v843_v3  ;;  %v823_v4 = vmul.f32 %v786_v2, %v1656_v8  ;;  %v841_v17 = vsel %vm832_vm0, %v822_v63, -1e+30 }
 0x3e6   :  { %v844_v9 = vsel %vm832_vm0, %v825_v0, -1e+30 }
 0x3e7   :  { %v1747_v13 = vsel %vm832_vm0, %v823_v4, -1e+30 }
 0x3e9   :  { %865 = vmax.xlane.f32.xlu1 %v841_v17  ;;  %871 = vmax.xlane.f32.xlu0 %v844_v9  ;;  %v1259_v7 = vpop.f32.mrb[28].mxu1 }
 0x3ea   :  { %v799_v19 = vpop.f32.mrb[29].mxu1  ;;  %v828_v8 = vmul.f32 %v1259_v7, %v1674_v44 }
 0x3eb   :  { %v826_v10 = vmul.f32 %v799_v19, %v1666_v24  ;;  %v1260_v11 = vpop.f32.mrb[30].mxu1 }
 0x3ec   :  { %v802_v12 = vpop.f32.mrb[31].mxu1  ;;  %v829_v15 = vmul.f32 %v1260_v11, %v1676_v46  ;;  %v1765_v44 = vsel %vm832_vm0, %v828_v8, -1e+30 }
 0x3ed   :  { %v827_v14 = vmul.f32 %v802_v12, %v1670_v31  ;;  %867 = vmax.xlane.f32.xlu0 %v1747_v13  ;;  %v1754_v6 = vsel %vm832_vm0, %v826_v10, -1e+30 }
 0x3ee   :  { %873 = vmax.xlane.f32.xlu1 %v1754_v6  ;;  %v1770_v31 = vsel %vm832_vm0, %v829_v15, -1e+30 }
 0x3ef   :  { %v1759_v24 = vsel %vm832_vm0, %v827_v14, -1e+30 }
 0x3f1   :  { %875 = vmax.xlane.f32.xlu0 %v1759_v24 }
 0x3f2   :  { %877 = vmax.xlane.f32.xlu1 %v1765_v44 }
 0x3f5   :  { %879 = vmax.xlane.f32.xlu0 %v1770_v31 }
 0x462   :  { %v854_v16 = vpop.xlane.xlu0 %853 }
 0x463   :  { %v1773_v18 = vsub.f32 %v835_v40, %v854_v16 }
 0x465   :  { %v901_v20 = vmul.f32 1.442695, %v1773_v18  ;;  %v852_v46 = vpop.xlane.xlu1 %851 }
 0x466   :  { %v850_v21 = vpop.xlane.xlu0 %849  ;;  %v1780_v25 = vsub.f32 %v1714_v39, %v852_v46 }
 0x467   :  { %1295 = vpow2.f32 %v901_v20  ;;  %v1776_v22 = vsub.f32 %v833_v52, %v850_v21 }
 0x468   :  { %v899_v5 = vmul.f32 1.442695, %v1780_v25 }
 0x469   :  { %v897_v23 = vmul.f32 1.442695, %v1776_v22 }
 0x46a   :  { %v856_v26 = vpop.xlane.xlu0 %855  ;;  %v862_v28 = vpop.xlane.xlu1 %861 }
 0x46b   :  { %1297 = vpow2.f32 %v897_v23  ;;  %v1782_v32 = vsub.f32 %v836_v50, %v856_v26  ;;  %v1784_v34 = vsub.f32 %v839_v54, %v862_v28 }
 0x46d   :  { %v903_v36 = vmul.f32 1.442695, %v1782_v32  ;;  %v909_v43 = vmul.f32 1.442695, %v1784_v34 }
 0x46e   :  { %v858_v29 = vpop.xlane.xlu1 %857  ;;  %v864_v33 = vpop.xlane.xlu0 %863 }
 0x46f   :  { %1299 = vpow2.f32 %v903_v36  ;;  %v1789_v27 = vsub.f32 %v837_v58, %v858_v29  ;;  %v1791_v30 = vsub.f32 %v840_v59, %v864_v33 }
 0x470   :  { %1301 = vpow2.f32 %v909_v43 }
 0x471   :  { %v1296_v37 = vpop.eup %1295  ;;  %v905_v38 = vmul.f32 1.442695, %v1789_v27  ;;  %1303 = vpow2.f32 %v899_v5  ;;  %v911_v41 = vmul.f32 1.442695, %v1791_v30 }
 0x472   :  { %v860_v35 = vpop.xlane.xlu0 %859  ;;  %v870_v40 = vpop.xlane.xlu1 %869  ;;  %933 = vadd.xlane.f32.xlu1 %v1296_v37 }
 0x473   :  { %1305 = vpow2.f32 %v905_v38  ;;  %v1795_v39 = vsub.f32 %v838_v56, %v860_v35  ;;  %v1797_v42 = vsub.f32 %v843_v3, %v870_v40 }
 0x474   :  { %1307 = vpow2.f32 %v911_v41 }
 0x475   :  { %v1298_v52 = vpop.eup %1297  ;;  %v917_v51 = vmul.f32 1.442695, %v1797_v42  ;;  %v907_v45 = vmul.f32 1.442695, %v1795_v39 }
 0x476   :  { %v866_v47 = vpop.xlane.xlu1 %865  ;;  %v872_v48 = vpop.xlane.xlu0 %871  ;;  %929 = vadd.xlane.f32.xlu1 %v1298_v52 }
 0x477   :  { %v1801_v53 = vsub.f32 %v841_v17, %v866_v47  ;;  %v1803_v1 = vsub.f32 %v844_v9, %v872_v48  ;;  %1309 = vpow2.f32 %v917_v51 }
 0x478   :  { %1311 = vpow2.f32 %v907_v45 }
 0x479   :  { %v1300_v49 = vpop.eup %1299  ;;  %v913_v50 = vmul.f32 1.442695, %v1801_v53  ;;  %v919_v58 = vmul.f32 1.442695, %v1803_v1 }
 0x47a   :  { %v1302_v54 = vpop.eup %1301  ;;  %v868_v57 = vpop.xlane.xlu0 %867  ;;  %935 = vadd.xlane.f32.xlu0 %v1300_v49 }
 0x47b   :  { %1313 = vpow2.f32 %v913_v50  ;;  %v1808_v59 = vsub.f32 %v1747_v13, %v868_v57  ;;  %941 = vadd.xlane.f32.xlu1 %v1302_v54  ;;  %v874_v55 = vpop.xlane.xlu1 %873  ;;  %v1304_v60 = vpop.eup %1303 }
 0x47c   :  { %v1811_v61 = vsub.f32 %v1754_v6, %v874_v55  ;;  %1315 = vpow2.f32 %v919_v58 }
 0x47d   :  { %v1306_v62 = vpop.eup %1305  ;;  %v915_v2 = vmul.f32 1.442695, %v1808_v59 }
 0x47e   :  { %v921_v63 = vmul.f32 1.442695, %v1811_v61  ;;  %931 = vadd.xlane.f32.xlu0 %v1304_v60  ;;  %v876_v0 = vpop.xlane.xlu0 %875  ;;  %v1308_v17 = vpop.eup %1307 }
 0x47f   :  { %937 = vadd.xlane.f32.xlu1 %v1306_v62  ;;  %v1816_v56 = vsub.f32 %v1759_v24, %v876_v0  ;;  %v878_v3 = vpop.xlane.xlu1 %877 }
 0x480   :  { %1317 = vpow2.f32 %v921_v63  ;;  %v1819_v4 = vsub.f32 %v1765_v44, %v878_v3 }
 0x481   :  { %v1310_v9 = vpop.eup %1309  ;;  %1319 = vpow2.f32 %v915_v2  ;;  %v923_v10 = vmul.f32 1.442695, %v1816_v56 }
 0x482   :  { %v925_v7 = vmul.f32 1.442695, %v1819_v4  ;;  %943 = vadd.xlane.f32.xlu0 %v1308_v17  ;;  %v880_v19 = vpop.xlane.xlu0 %879  ;;  %v1312_v12 = vpop.eup %1311 }
 0x483   :  { %949 = vadd.xlane.f32.xlu1 %v1310_v9  ;;  %v1824_v11 = vsub.f32 %v1770_v31, %v880_v19 }
 0x484   :  { %1321 = vpow2.f32 %v925_v7 }
 0x485   :  { %v1314_v13 = vpop.eup %1313  ;;  %1323 = vpow2.f32 %v923_v10  ;;  %v927_v8 = vmul.f32 1.442695, %v1824_v11 }
 0x486   :  { %939 = vadd.xlane.f32.xlu0 %v1312_v12  ;;  %v1316_v14 = vpop.eup %1315 }
 0x487   :  { %945 = vadd.xlane.f32.xlu1 %v1314_v13  ;;  %1325 = vpow2.f32 %v927_v8 }
 0x48a   :  { %v1318_v6 = vpop.eup %1317  ;;  %951 = vadd.xlane.f32.xlu0 %v1316_v14 }
 0x48b   :  { %953 = vadd.xlane.f32.xlu1 %v1318_v6  ;;  %v1320_v24 = vpop.eup %1319 }
 0x48e   :  { %v1322_v15 = vpop.eup %1321  ;;  %947 = vadd.xlane.f32.xlu0 %v1320_v24 }
 0x48f   :  { %957 = vadd.xlane.f32.xlu1 %v1322_v15  ;;  %v1324_v44 = vpop.eup %1323 }
 0x491   :  { %v1326_v31 = vpop.eup %1325 }
 0x492   :  { %955 = vadd.xlane.f32.xlu0 %v1324_v44 }
 0x496   :  { %959 = vadd.xlane.f32.xlu0 %v1326_v31 }
 0x4ff   :  { %v934_v16 = vpop.xlane.xlu1 %933 }
 0x500   :  { %1327 = vlog2.f32 %v934_v16 }
 0x503   :  { %v930_v20 = vpop.xlane.xlu1 %929 }
 0x504   :  { %1329 = vlog2.f32 %v930_v20 }
 0x507   :  { %v936_v46 = vpop.xlane.xlu0 %935 }
 0x508   :  { %v942_v21 = vpop.xlane.xlu1 %941  ;;  %1331 = vlog2.f32 %v936_v46 }
 0x509   :  { %1333 = vlog2.f32 %v942_v21 }
 0x50a   :  { %v1328_v23 = vpop.eup %1327 }
 0x50b   :  { %v966_v26 = vmul.f32 0.6931472, %v1328_v23  ;;  %v932_v28 = vpop.xlane.xlu0 %931 }
 0x50c   :  { %v938_v36 = vpop.xlane.xlu1 %937  ;;  %1335 = vlog2.f32 %v932_v28 }
 0x50d   :  { %v995_v43 = vsub.f32 %v1773_v18, %v966_v26  ;;  %1337 = vlog2.f32 %v938_v36 }
 0x50e   :  { %v1330_v5 = vpop.eup %1329 }
 0x50f   :  { %1011 = vst [vmem:[#allocation7 + $0x10] sm:$0xff] %v995_v43  ;;  %v962_v29 = vmul.f32 0.6931472, %v1330_v5  ;;  %v944_v33 = vpop.xlane.xlu0 %943 }
 0x510   :  { %v950_v37 = vpop.xlane.xlu1 %949  ;;  %1339 = vlog2.f32 %v944_v33 }
 0x511   :  { %v993_v38 = vsub.f32 %v1776_v22, %v962_v29  ;;  %1341 = vlog2.f32 %v950_v37 }
 0x512   :  { %v1332_v35 = vpop.eup %1331 }
 0x513   :  { %v1334_v40 = vpop.eup %1333  ;;  %1009 = vst [vmem:[#allocation7] sm:$0xff] %v993_v38  ;;  %v968_v41 = vmul.f32 0.6931472, %v1332_v35  ;;  %v940_v52 = vpop.xlane.xlu0 %939 }
 0x514   :  { %v974_v51 = vmul.f32 0.6931472, %v1334_v40  ;;  %v946_v45 = vpop.xlane.xlu1 %945  ;;  %1343 = vlog2.f32 %v940_v52 }
 0x515   :  { %v996_v18 = vsub.f32 %v1782_v32, %v968_v41  ;;  %1345 = vlog2.f32 %v946_v45 }
 0x516   :  { %v1336_v47 = vpop.eup %1335  ;;  %v999_v48 = vsub.f32 %v1784_v34, %v974_v51 }
 0x517   :  { %v1338_v49 = vpop.eup %1337  ;;  %1012 = vst [vmem:[#allocation7 + $0x18] sm:$0xff] %v996_v18  ;;  %v964_v50 = vmul.f32 0.6931472, %v1336_v47  ;;  %v952_v54 = vpop.xlane.xlu0 %951 }
 0x518   :  { %1015 = vst [vmem:[#allocation7 + $0x30] sm:$0xff] %v999_v48  ;;  %v970_v22 = vmul.f32 0.6931472, %v1338_v49  ;;  %1347 = vlog2.f32 %v952_v54  ;;  %v954_v57 = vpop.xlane.xlu1 %953 }
 0x519   :  { %v994_v58 = vsub.f32 %v1780_v25, %v964_v50  ;;  %1349 = vlog2.f32 %v954_v57 }
 0x51a   :  { %v1340_v55 = vpop.eup %1339  ;;  %v997_v60 = vsub.f32 %v1789_v27, %v970_v22 }
 0x51b   :  { %v1342_v62 = vpop.eup %1341  ;;  %1010 = vst [vmem:[#allocation7 + $0x8] sm:$0xff] %v994_v58  ;;  %v976_v32 = vmul.f32 0.6931472, %v1340_v55  ;;  %v948_v63 = vpop.xlane.xlu0 %947 }
 0x51c   :  { %1013 = vst [vmem:[#allocation7 + $0x20] sm:$0xff] %v997_v60  ;;  %v982_v34 = vmul.f32 0.6931472, %v1342_v62  ;;  %1351 = vlog2.f32 %v948_v63  ;;  %v958_v0 = vpop.xlane.xlu1 %957 }
 0x51d   :  { %v1000_v2 = vsub.f32 %v1791_v30, %v976_v32  ;;  %1353 = vlog2.f32 %v958_v0 }
 0x51e   :  { %v1344_v3 = vpop.eup %1343  ;;  %v1003_v17 = vsub.f32 %v1797_v42, %v982_v34 }
 0x51f   :  { %v1346_v9 = vpop.eup %1345  ;;  %1016 = vst [vmem:[#allocation7 + $0x38] sm:$0xff] %v1000_v2  ;;  %v972_v25 = vmul.f32 0.6931472, %v1344_v3  ;;  %v956_v7 = vpop.xlane.xlu0 %955 }
 0x520   :  { %1019 = vst [vmem:[#allocation7 + $0x50] sm:$0xff] %v1003_v17  ;;  %v978_v27 = vmul.f32 0.6931472, %v1346_v9  ;;  %1355 = vlog2.f32 %v956_v7 }
 0x521   :  { %v998_v19 = vsub.f32 %v1795_v39, %v972_v25 }
 0x522   :  { %v1348_v10 = vpop.eup %1347  ;;  %v1001_v12 = vsub.f32 %v1801_v53, %v978_v27 }
 0x523   :  { %v1350_v13 = vpop.eup %1349  ;;  %1014 = vst [vmem:[#allocation7 + $0x28] sm:$0xff] %v998_v19  ;;  %v984_v8 = vmul.f32 0.6931472, %v1348_v10  ;;  %v960_v30 = vpop.xlane.xlu0 %959 }
 0x524   :  { %1017 = vst [vmem:[#allocation7 + $0x40] sm:$0xff] %v1001_v12  ;;  %v986_v14 = vmul.f32 0.6931472, %v1350_v13  ;;  %1357 = vlog2.f32 %v960_v30 }
 0x525   :  { %v1004_v42 = vsub.f32 %v1803_v1, %v984_v8 }
 0x526   :  { %v1352_v6 = vpop.eup %1351  ;;  %v1005_v24 = vsub.f32 %v1811_v61, %v986_v14 }
 0x527   :  { %v1354_v15 = vpop.eup %1353  ;;  %1020 = vst [vmem:[#allocation7 + $0x58] sm:$0xff] %v1004_v42  ;;  %v980_v44 = vmul.f32 0.6931472, %v1352_v6 }
 0x528   :  { %1021 = vst [vmem:[#allocation7 + $0x60] sm:$0xff] %v1005_v24  ;;  %v990_v39 = vmul.f32 0.6931472, %v1354_v15 }
 0x529   :  { %v1002_v31 = vsub.f32 %v1808_v59, %v980_v44 }
 0x52a   :  { %v1356_v53 = vpop.eup %1355  ;;  %v1007_v16 = vsub.f32 %v1819_v4, %v990_v39 }
 0x52b   :  { %1018 = vst [vmem:[#allocation7 + $0x48] sm:$0xff] %v1002_v31  ;;  %v988_v20 = vmul.f32 0.6931472, %v1356_v53 }
 0x52c   :  { %1023 = vst [vmem:[#allocation7 + $0x70] sm:$0xff] %v1007_v16 }
 0x52d   :  { %v1006_v46 = vsub.f32 %v1816_v56, %v988_v20 }
 0x52e   :  { %v1358_v21 = vpop.eup %1357 }
 0x52f   :  { %1022 = vst [vmem:[#allocation7 + $0x68] sm:$0xff] %v1006_v46  ;;  %v992_v1 = vmul.f32 0.6931472, %v1358_v21 }
 0x531   :  { %v1008_v61 = vsub.f32 %v1824_v11, %v992_v1 }
 0x533   :  { %1024 = vst [vmem:[#allocation7 + $0x78] sm:$0xff] %v1008_v61 }
 0x534   :  { %1414 = shalt.err (!%p1411_p6)
}
 0x535   :  { %s1415_s27 = scalar_lea.hbm %s1865_s7, 2048 }
 0x536   :  { %p1416_p7 = scmp.ne.s32.totalorder %s1865_s7, %s1415_s27  ;;  %p1419_p8 = scmp.lt.u32.totalorder %s1415_s27, %s1865_s7 }
 0x538   :  { %p1421_p9 = pnand %p1419_p8, %p1416_p7 }
 0x53a   :  { %1424 = shalt.err (!%p1421_p9)
}
 0x53b   :  { %1036 = dma.vmem_to_hbm [thread:$0]  %s1031_s24, 2048, %s1865_s7, [#allocation4], %s1432_s11, %s1432_s11, %s1433_s12  }
 0x53c   :  { %1429 = dma.done.wait [#allocation4], 2048  }
 0x53d   :  { %1430 = vsyncadd [#allocation4], 4294965248 }
 0x53e   :  { %1040 = vsyncpa [#allocation3], 1 }
 0x53f   :  { %1041 = vsyncpa [#allocation6], 1 }
 0x540   :  { %1042 = vsyncpa [#allocation4], 1 }

</bundles_post_ra>
